<compile_context>
chip_gen: v7x
topology: tpu7x:2x2x1
jax: 0.10.0
libtpu: 0.0.40
codegen_flags: <defaults>
</compile_context>

<pallas_src>
import functools
import math

import jax
import jax.numpy as jnp
from jax.experimental import pallas as pl
from jax.experimental.pallas import tpu as pltpu

EPS = 1e-5


# ---------------------------------------------------------------------------
# Pass 1: per-channel sum / sum-of-squares of x  (BN1 batch statistics)
# ---------------------------------------------------------------------------
def _stats_kernel(x_ref, sum_ref, ssq_ref):
    # x_ref: (C, TP) f32 pixel tile of one image; outputs: (C, 1) f32 accumulators.
    first = (pl.program_id(0) == 0) & (pl.program_id(1) == 0)

    @pl.when(first)
    def _():
        sum_ref[...] = jnp.zeros_like(sum_ref)
        ssq_ref[...] = jnp.zeros_like(ssq_ref)

    x = x_ref[...]
    # NOTE: single-pass sum/sumsq (biased var computed in the wrapper); fine for
    # normalized activations, consider a pivot for inputs with |mean| >> std.
    sum_ref[...] += jnp.sum(x, axis=1, keepdims=True)
    ssq_ref[...] += jnp.sum(x * x, axis=1, keepdims=True)


# ---------------------------------------------------------------------------
# Pass 2: per-channel sum / sum-of-squares of h = relu(conv1x1(bn1(x)))
#         (BN2 batch statistics; BN1 already folded into w1f / b1f)
# ---------------------------------------------------------------------------
def _h_stats_kernel(x_ref, w1_ref, b1_ref, sum_ref, ssq_ref):
    first = (pl.program_id(0) == 0) & (pl.program_id(1) == 0)

    @pl.when(first)
    def _():
        sum_ref[...] = jnp.zeros_like(sum_ref)
        ssq_ref[...] = jnp.zeros_like(ssq_ref)

    x = x_ref[...].astype(jnp.bfloat16)                         # (Cin, TP)
    h = jnp.dot(w1_ref[...], x, preferred_element_type=jnp.float32)
    h = jnp.maximum(h + b1_ref[...], 0.0)                       # (Cmid, TP) f32
    sum_ref[...] += jnp.sum(h, axis=1, keepdims=True)
    ssq_ref[...] += jnp.sum(h * h, axis=1, keepdims=True)


# ---------------------------------------------------------------------------
# Pass 3 (main): fused BN1+1x1conv+ReLU (recomputed, BN1 folded into weights)
#                -> +off2 (BN2 scale folded into w2) -> 3x3 SAME conv -> ReLU
# ---------------------------------------------------------------------------
def _conv_kernel(x_ref, w1_ref, b1_ref, w2_ref, off2_ref, o_ref, *, W):
    # x_ref:    (Cin,  HW)        f32   one image, pixels flattened onto lanes
    # w1_ref:   (Cmid, Cin)       bf16  BN1-folded 1x1 conv weight
    # b1_ref:   (Cmid, 1)         f32   BN1-folded bias
    # w2_ref:   (9, Cout, Cmid)   bf16  BN2-scale-folded 3x3 taps (dy-major, dx-minor)
    # off2_ref: (Cmid, 1)         f32   BN2 shift / scale, added before the conv
    # o_ref:    (Cout, HW)        output (lane-dense store)
    Cin, HW = x_ref.shape
    Cmid = w1_ref.shape[0]
    Cout = w2_ref.shape[1]

    # 1x1 conv (BN1 folded) + ReLU; bf16 MXU inputs, f32 accumulation.
    x = x_ref[...].astype(jnp.bfloat16)
    h = jnp.dot(w1_ref[...], x, preferred_element_type=jnp.float32)   # (Cmid, HW)
    h = jnp.maximum(h + b1_ref[...], 0.0)

    # BN2: scale lives in w2, only the offset is added here.  The SAME-conv zero
    # padding must see 0 (not off2): the structural zero border below provides
    # that for dy=+-1; the column masks handle the dx=+-1 wrap.
    hb = (h + off2_ref[...]).astype(jnp.bfloat16)

    # Structural, lane-aligned zero border along the flattened pixel axis.
    PAD = ((W + 1 + 127) // 128) * 128                          # >= W+1
    zeros = jnp.zeros((Cmid, PAD), jnp.bfloat16)
    hp = jnp.concatenate([zeros, hb, zeros], axis=1)            # (Cmid, HW + 2*PAD)

    # Column-wrap masks, computed once and reused by 3 taps each.
    col = jax.lax.broadcasted_iota(jnp.int32, (1, HW), 1) % W
    m_left = col >= 1                                           # dx = -1 invalid in col 0
    m_right = col <= W - 2                                      # dx = +1 invalid in col W-1

    # 3x3 SAME conv as 9 accumulated MXU dots (K = Cmid each) into one f32 acc.
    w2 = w2_ref[...]
    acc = jnp.zeros((Cout, HW), jnp.float32)
    t = 0
    for dy in (-1, 0, 1):
        for dx in (-1, 0, 1):
            s = dy * W + dx
            tap = hp[:, PAD + s:PAD + s + HW]                   # hb[:, p + s]
            if dx == -1:
                tap = jnp.where(m_left, tap, 0.0)
            elif dx == 1:
                tap = jnp.where(m_right, tap, 0.0)
            acc = acc + jnp.dot(w2[t], tap, preferred_element_type=jnp.float32)
            t += 1

    o_ref[...] = jnp.maximum(acc, 0.0).astype(o_ref.dtype)


def _pixel_tile(hw, max_tile=8192):
    """Pixel-tile size for the stats kernels: divides hw, multiple of 128 if tiled."""
    if hw <= max_tile:
        return hw
    for t in range(max_tile - max_tile % 128, 127, -128):
        if hw % t == 0:
            return t
    return hw


@functools.partial(jax.jit, static_argnames=("out_dtype",))
def vgg_block(x, g1, b1, w1, g2, b2, w2, *, out_dtype=jnp.float32):
    """VGGBlock forward. x: (N,Cin,H,W) f32, w1: (Cmid,Cin,1,1), w2: (Cout,Cmid,3,3).

    out_dtype=jnp.bfloat16 halves the output writeback for mem-bound use; the
    default stays f32 to match the PyTorch module's output dtype exactly.
    """
    N, Cin, H, W = x.shape
    Cmid = w1.shape[0]
    Cout = w2.shape[0]
    HW = H * W
    n_px = N * HW

    # Free reshapes only (no transposes, no extra HBM traffic).
    x3 = x.reshape(N, Cin, HW)

    TP = _pixel_tile(HW)
    P = HW // TP
    arb2 = pltpu.CompilerParams(dimension_semantics=("arbitrary", "arbitrary"))
    x_tile_spec = pl.BlockSpec((None, Cin, TP), lambda n, p: (n, 0, p))
    stat_out = lambda C: (jax.ShapeDtypeStruct((C, 1), jnp.float32),) * 2
    stat_spec = lambda C: (pl.BlockSpec((C, 1), lambda n, p: (0, 0)),) * 2
    full2 = lambda shape: pl.BlockSpec(shape, lambda n, p: (0,) * len(shape))

    # ---- Pass 1: BN1 batch statistics (grid-accumulated) ----
    s1, q1 = pl.pallas_call(
        _stats_kernel,
        grid=(N, P),
        in_specs=[x_tile_spec],
        out_specs=stat_spec(Cin),
        out_shape=stat_out(Cin),
        compiler_params=arb2,
    )(x3)
    mu1 = s1[:, 0] / n_px
    var1 = q1[:, 0] / n_px - mu1 * mu1          # biased (training-mode) variance
    sc1 = g1 * jax.lax.rsqrt(var1 + EPS)
    sh1 = b1 - mu1 * sc1
    # Fold BN1 exactly into the 1x1 conv.
    w1m = w1.reshape(Cmid, Cin)
    w1f = (w1m * sc1[None, :]).astype(jnp.bfloat16)
    b1f = (w1m @ sh1).reshape(Cmid, 1)

    # ---- Pass 2: BN2 batch statistics of h = relu(conv1(bn1(x))) ----
    s2, q2 = pl.pallas_call(
        _h_stats_kernel,
        grid=(N, P),
        in_specs=[x_tile_spec, full2((Cmid, Cin)), full2((Cmid, 1))],
        out_specs=stat_spec(Cmid),
        out_shape=stat_out(Cmid),
        compiler_params=arb2,
    )(x3, w1f, b1f)
    mu2 = s2[:, 0] / n_px
    var2 = q2[:, 0] / n_px - mu2 * mu2
    sc2 = g2 * jax.lax.rsqrt(var2 + EPS)
    sh2 = b2 - mu2 * sc2
    # Fold the BN2 scale into w2 (per input channel, per tap); keep the shift as
    # an explicit pre-conv add (SAME zero padding makes a folded output bias
    # position dependent at borders).  Valid as long as gamma2 != 0.
    off2 = (sh2 / sc2).reshape(Cmid, 1)
    w2f = jnp.transpose(w2 * sc2[None, :, None, None], (2, 3, 0, 1))
    w2f = w2f.reshape(9, Cout, Cmid).astype(jnp.bfloat16)

    # ---- Pass 3: fused conv1(+BN1) -> +off2 -> 3x3 conv(+BN2 scale) -> ReLU ----
    flops = 2 * n_px * (Cmid * Cin + 9 * Cmid * Cout)
    bytes_accessed = (x.size * 4 + N * Cout * HW * jnp.dtype(out_dtype).itemsize
                      + w1f.size * 2 + w2f.size * 2 + 4 * Cmid * 2)
    out3 = pl.pallas_call(
        functools.partial(_conv_kernel, W=W),
        grid=(N,),
        in_specs=[
            pl.BlockSpec((None, Cin, HW), lambda n: (n, 0, 0)),
            pl.BlockSpec((Cmid, Cin), lambda n: (0, 0)),
            pl.BlockSpec((Cmid, 1), lambda n: (0, 0)),
            pl.BlockSpec((9, Cout, Cmid), lambda n: (0, 0, 0)),
            pl.BlockSpec((Cmid, 1), lambda n: (0, 0)),
        ],
        out_specs=pl.BlockSpec((None, Cout, HW), lambda n: (n, 0, 0)),
        out_shape=jax.ShapeDtypeStruct((N, Cout, HW), out_dtype),
        compiler_params=pltpu.CompilerParams(
            dimension_semantics=("parallel",),          # shard batch across TCs (v7x)
            vmem_limit_bytes=48 * 1024 * 1024),
        cost_estimate=pl.CostEstimate(
            flops=int(flops), transcendentals=0, bytes_accessed=int(bytes_accessed)),
    )(x3, w1f, b1f, w2f, off2)

    return out3.reshape(N, Cout, H, W)


def reference(x, g1, b1, w1, g2, b2, w2):
    """Pure-JAX f32 reference with PyTorch training-mode BN semantics."""
    def bn(y, g, b):
        mu = jnp.mean(y, axis=(0, 2, 3), keepdims=True)
        var = jnp.mean((y - mu) ** 2, axis=(0, 2, 3), keepdims=True)
        return (y - mu) * jax.lax.rsqrt(var + EPS) * g.reshape(1, -1, 1, 1) \
            + b.reshape(1, -1, 1, 1)

    y = bn(x.astype(jnp.float32), g1, b1)
    y = jax.lax.conv_general_dilated(
        y, w1, (1, 1), 'SAME', dimension_numbers=('NCHW', 'OIHW', 'NCHW'),
        precision=jax.lax.Precision.HIGHEST)
    y = jnp.maximum(y, 0.0)
    y = bn(y, g2, b2)
    y = jax.lax.conv_general_dilated(
        y, w2, (1, 1), 'SAME', dimension_numbers=('NCHW', 'OIHW', 'NCHW'),
        precision=jax.lax.Precision.HIGHEST)
    return jnp.maximum(y, 0.0)


def init_params(key, Cin, Cmid, Cout):
    k1, k2, k3, k4 = jax.random.split(key, 4)
    # kaiming_uniform_ (a=0, leaky_relu): bound = sqrt(6 / fan_in)
    bound1 = math.sqrt(6.0 / (Cin * 1 * 1))
    w1 = jax.random.uniform(k1, (Cmid, Cin, 1, 1), jnp.float32, -bound1, bound1)
    bound2 = math.sqrt(6.0 / (Cmid * 3 * 3))
    w2 = jax.random.uniform(k2, (Cout, Cmid, 3, 3), jnp.float32, -bound2, bound2)
    # BatchNorm: weight ~ N(1.0, 0.02), bias = 0
    g1 = 1.0 + 0.02 * jax.random.normal(k3, (Cin,), jnp.float32)
    b1 = jnp.zeros((Cin,), jnp.float32)
    g2 = 1.0 + 0.02 * jax.random.normal(k4, (Cmid,), jnp.float32)
    b2 = jnp.zeros((Cmid,), jnp.float32)
    return g1, b1, w1, g2, b2, w2


if __name__ == "__main__":
    N, H, W = 2, 16, 16
    Cin, Cmid, Cout = 4, 8, 8

    key = jax.random.PRNGKey(0)
    kx, kp = jax.random.split(key)
    x = jax.random.normal(kx, (N, Cin, H, W), jnp.float32)
    g1, b1, w1, g2, b2, w2 = init_params(kp, Cin, Cmid, Cout)

    out = jax.block_until_ready(vgg_block(x, g1, b1, w1, g2, b2, w2))
    ref = reference(x, g1, b1, w1, g2, b2, w2)

    assert out.shape == (N, Cout, H, W)
    err = float(jnp.max(jnp.abs(out - ref)))
    # bf16 MXU inputs (f32 accumulation) vs f32 reference -> a few 1e-3 of error.
    assert jnp.allclose(out, ref, atol=2e-2, rtol=2e-2), err

    print("KERNEL_OK")
</pallas_src>

<mosaic_0001>
module attributes {stable_mosaic.version = 11 : i64} {
  func.func @_stats_kernel(%arg0: i32, %arg1: i32, %arg2: memref<1x4x256xf32, #tpu.memory_space<vmem>>, %arg3: memref<4x1xf32, #tpu.memory_space<vmem>>, %arg4: memref<4x1xf32, #tpu.memory_space<vmem>>) attributes {dimension_semantics = [#tpu.dimension_semantics<arbitrary>, #tpu.dimension_semantics<arbitrary>], iteration_bounds = array<i64: 2, 1>, scalar_prefetch = 0 : i64, scratch_operands = 0 : i64, tpu.core_type = #tpu.core_type<tc>, window_params = [{transform_indices = @transform_0, window_bounds = array<i64: 1, 4, 256>}, {pipeline_mode = #tpu.pipeline_mode<synchronous>, transform_indices = @transform_1, window_bounds = array<i64: 4, 1>}, {pipeline_mode = #tpu.pipeline_mode<synchronous>, transform_indices = @transform_2, window_bounds = array<i64: 4, 1>}]} {
    %c0_i32 = arith.constant 0 : i32
    %0 = arith.cmpi eq, %arg0, %c0_i32 : i32
    %c0_i32_0 = arith.constant 0 : i32
    %1 = arith.cmpi eq, %arg1, %c0_i32_0 : i32
    %2 = arith.andi %0, %1 : i1
    %3 = arith.extui %2 : i1 to i32
    %c0_i32_1 = arith.constant 0 : i32
    %4 = arith.cmpi ne, %3, %c0_i32_1 : i32
    scf.if %4 {
      %cst_13 = arith.constant 0.000000e+00 : f32
      %18 = vector.broadcast %cst_13 : f32 to vector<4x1xf32>
      %c0_14 = arith.constant 0 : index
      %c0_15 = arith.constant 0 : index
      %19 = vector.load %arg3[%c0_14, %c0_15] : memref<4x1xf32, #tpu.memory_space<vmem>>, vector<4x1xf32>
      tpu.vector_store %arg3[%c0_14, %c0_15], %18 {strides = array<i32>} : memref<4x1xf32, #tpu.memory_space<vmem>>, vector<4x1xf32>,
      %cst_16 = arith.constant 0.000000e+00 : f32
      %20 = vector.broadcast %cst_16 : f32 to vector<4x1xf32>
      %c0_17 = arith.constant 0 : index
      %c0_18 = arith.constant 0 : index
      %21 = vector.load %arg4[%c0_17, %c0_18] : memref<4x1xf32, #tpu.memory_space<vmem>>, vector<4x1xf32>
      tpu.vector_store %arg4[%c0_17, %c0_18], %20 {strides = array<i32>} : memref<4x1xf32, #tpu.memory_space<vmem>>, vector<4x1xf32>,
    } else {
    }
    %c0 = arith.constant 0 : index
    %c0_2 = arith.constant 0 : index
    %c0_3 = arith.constant 0 : index
    %5 = vector.load %arg2[%c0, %c0_2, %c0_3] : memref<1x4x256xf32, #tpu.memory_space<vmem>>, vector<1x4x256xf32>
    %6 = vector.shape_cast %5 : vector<1x4x256xf32> to vector<4x256xf32>
    %c0_4 = arith.constant 0 : index
    %c0_5 = arith.constant 0 : index
    %7 = vector.load %arg3[%c0_4, %c0_5] : memref<4x1xf32, #tpu.memory_space<vmem>>, vector<4x1xf32>
    %cst = arith.constant dense<0.000000e+00> : vector<4xf32>
    %8 = vector.multi_reduction <add>, %6, %cst [1] : vector<4x256xf32> to vector<4xf32>
    %9 = vector.shape_cast %8 : vector<4xf32> to vector<4x1xf32>
    %10 = arith.addf %7, %9 : vector<4x1xf32>
    %c0_6 = arith.constant 0 : index
    %c0_7 = arith.constant 0 : index
    %11 = vector.load %arg3[%c0_6, %c0_7] : memref<4x1xf32, #tpu.memory_space<vmem>>, vector<4x1xf32>
    tpu.vector_store %arg3[%c0_6, %c0_7], %10 {strides = array<i32>} : memref<4x1xf32, #tpu.memory_space<vmem>>, vector<4x1xf32>,
    %c0_8 = arith.constant 0 : index
    %c0_9 = arith.constant 0 : index
    %12 = vector.load %arg4[%c0_8, %c0_9] : memref<4x1xf32, #tpu.memory_space<vmem>>, vector<4x1xf32>
    %13 = arith.mulf %6, %6 : vector<4x256xf32>
    %cst_10 = arith.constant dense<0.000000e+00> : vector<4xf32>
    %14 = vector.multi_reduction <add>, %13, %cst_10 [1] : vector<4x256xf32> to vector<4xf32>
    %15 = vector.shape_cast %14 : vector<4xf32> to vector<4x1xf32>
    %16 = arith.addf %12, %15 : vector<4x1xf32>
    %c0_11 = arith.constant 0 : index
    %c0_12 = arith.constant 0 : index
    %17 = vector.load %arg4[%c0_11, %c0_12] : memref<4x1xf32, #tpu.memory_space<vmem>>, vector<4x1xf32>
    tpu.vector_store %arg4[%c0_11, %c0_12], %16 {strides = array<i32>} : memref<4x1xf32, #tpu.memory_space<vmem>>, vector<4x1xf32>,
    return
  }
  func.func @transform_0(%arg0: i32, %arg1: i32) -> (i32, i32, i32) {
    %c0_i32 = arith.constant 0 : i32
    %c0_i32_0 = arith.constant 0 : i32
    return %arg0, %c0_i32, %arg1 : i32, i32, i32
  }
  func.func @transform_1(%arg0: i32, %arg1: i32) -> (i32, i32) {
    %c0_i32 = arith.constant 0 : i32
    %c0_i32_0 = arith.constant 0 : i32
    %c0_i32_1 = arith.constant 0 : i32
    return %c0_i32, %c0_i32_0 : i32, i32
  }
  func.func @transform_2(%arg0: i32, %arg1: i32) -> (i32, i32) {
    %c0_i32 = arith.constant 0 : i32
    %c0_i32_0 = arith.constant 0 : i32
    %c0_i32_1 = arith.constant 0 : i32
    return %c0_i32, %c0_i32_0 : i32, i32
  }
}

module attributes {stable_mosaic.version = 11 : i64} {
  func.func @_h_stats_kernel(%arg0: i32, %arg1: i32, %arg2: memref<1x4x256xf32, #tpu.memory_space<vmem>>, %arg3: memref<8x4xbf16, #tpu.memory_space<vmem>>, %arg4: memref<8x1xf32, #tpu.memory_space<vmem>>, %arg5: memref<8x1xf32, #tpu.memory_space<vmem>>, %arg6: memref<8x1xf32, #tpu.memory_space<vmem>>) attributes {dimension_semantics = [#tpu.dimension_semantics<arbitrary>, #tpu.dimension_semantics<arbitrary>], iteration_bounds = array<i64: 2, 1>, scalar_prefetch = 0 : i64, scratch_operands = 0 : i64, tpu.core_type = #tpu.core_type<tc>, window_params = [{transform_indices = @transform_0, window_bounds = array<i64: 1, 4, 256>}, {pipeline_mode = #tpu.pipeline_mode<synchronous>, transform_indices = @transform_1, window_bounds = array<i64: 8, 4>}, {pipeline_mode = #tpu.pipeline_mode<synchronous>, transform_indices = @transform_2, window_bounds = array<i64: 8, 1>}, {pipeline_mode = #tpu.pipeline_mode<synchronous>, transform_indices = @transform_3, window_bounds = array<i64: 8, 1>}, {pipeline_mode = #tpu.pipeline_mode<synchronous>, transform_indices = @transform_4, window_bounds = array<i64: 8, 1>}]} {
    %c0_i32 = arith.constant 0 : i32
    %0 = arith.cmpi eq, %arg0, %c0_i32 : i32
    %c0_i32_0 = arith.constant 0 : i32
    %1 = arith.cmpi eq, %arg1, %c0_i32_0 : i32
    %2 = arith.andi %0, %1 : i1
    %3 = arith.extui %2 : i1 to i32
    %c0_i32_1 = arith.constant 0 : i32
    %4 = arith.cmpi ne, %3, %c0_i32_1 : i32
    scf.if %4 {
      %cst_19 = arith.constant 0.000000e+00 : f32
      %26 = vector.broadcast %cst_19 : f32 to vector<8x1xf32>
      %c0_20 = arith.constant 0 : index
      %c0_21 = arith.constant 0 : index
      %27 = vector.load %arg5[%c0_20, %c0_21] : memref<8x1xf32, #tpu.memory_space<vmem>>, vector<8x1xf32>
      tpu.vector_store %arg5[%c0_20, %c0_21], %26 {strides = array<i32>} : memref<8x1xf32, #tpu.memory_space<vmem>>, vector<8x1xf32>,
      %cst_22 = arith.constant 0.000000e+00 : f32
      %28 = vector.broadcast %cst_22 : f32 to vector<8x1xf32>
      %c0_23 = arith.constant 0 : index
      %c0_24 = arith.constant 0 : index
      %29 = vector.load %arg6[%c0_23, %c0_24] : memref<8x1xf32, #tpu.memory_space<vmem>>, vector<8x1xf32>
      tpu.vector_store %arg6[%c0_23, %c0_24], %28 {strides = array<i32>} : memref<8x1xf32, #tpu.memory_space<vmem>>, vector<8x1xf32>,
    } else {
    }
    %c0 = arith.constant 0 : index
    %c0_2 = arith.constant 0 : index
    %c0_3 = arith.constant 0 : index
    %5 = vector.load %arg2[%c0, %c0_2, %c0_3] : memref<1x4x256xf32, #tpu.memory_space<vmem>>, vector<1x4x256xf32>
    %6 = vector.shape_cast %5 : vector<1x4x256xf32> to vector<4x256xf32>
    %7 = arith.truncf %6 : vector<4x256xf32> to vector<4x256xbf16>
    %c0_4 = arith.constant 0 : index
    %c0_5 = arith.constant 0 : index
    %8 = vector.load %arg3[%c0_4, %c0_5] : memref<8x4xbf16, #tpu.memory_space<vmem>>, vector<8x4xbf16>
    %cst = arith.constant dense<0.000000e+00> : vector<8x256xf32>
    %9 = tpu.matmul %8, %7, %cst {dimension_numbers = #tpu.dot_dimension_numbers<[1], [0], [0], [1], [0, 0, 1, 1], [], []>} : vector<8x4xbf16>, vector<4x256xbf16>, vector<8x256xf32> -> vector<8x256xf32>
    %c0_6 = arith.constant 0 : index
    %c0_7 = arith.constant 0 : index
    %10 = vector.load %arg4[%c0_6, %c0_7] : memref<8x1xf32, #tpu.memory_space<vmem>>, vector<8x1xf32>
    %11 = vector.broadcast %10 : vector<8x1xf32> to vector<8x256xf32>
    %12 = arith.addf %9, %11 : vector<8x256xf32>
    %cst_8 = arith.constant 0.000000e+00 : f32
    %13 = vector.broadcast %cst_8 : f32 to vector<8x256xf32>
    %14 = arith.maximumf %12, %13 : vector<8x256xf32>
    %c0_9 = arith.constant 0 : index
    %c0_10 = arith.constant 0 : index
    %15 = vector.load %arg5[%c0_9, %c0_10] : memref<8x1xf32, #tpu.memory_space<vmem>>, vector<8x1xf32>
    %cst_11 = arith.constant dense<0.000000e+00> : vector<8xf32>
    %16 = vector.multi_reduction <add>, %14, %cst_11 [1] : vector<8x256xf32> to vector<8xf32>
    %17 = vector.shape_cast %16 : vector<8xf32> to vector<8x1xf32>
    %18 = arith.addf %15, %17 : vector<8x1xf32>
    %c0_12 = arith.constant 0 : index
    %c0_13 = arith.constant 0 : index
    %19 = vector.load %arg5[%c0_12, %c0_13] : memref<8x1xf32, #tpu.memory_space<vmem>>, vector<8x1xf32>
    tpu.vector_store %arg5[%c0_12, %c0_13], %18 {strides = array<i32>} : memref<8x1xf32, #tpu.memory_space<vmem>>, vector<8x1xf32>,
    %c0_14 = arith.constant 0 : index
    %c0_15 = arith.constant 0 : index
    %20 = vector.load %arg6[%c0_14, %c0_15] : memref<8x1xf32, #tpu.memory_space<vmem>>, vector<8x1xf32>
    %21 = arith.mulf %14, %14 : vector<8x256xf32>
    %cst_16 = arith.constant dense<0.000000e+00> : vector<8xf32>
    %22 = vector.multi_reduction <add>, %21, %cst_16 [1] : vector<8x256xf32> to vector<8xf32>
    %23 = vector.shape_cast %22 : vector<8xf32> to vector<8x1xf32>
    %24 = arith.addf %20, %23 : vector<8x1xf32>
    %c0_17 = arith.constant 0 : index
    %c0_18 = arith.constant 0 : index
    %25 = vector.load %arg6[%c0_17, %c0_18] : memref<8x1xf32, #tpu.memory_space<vmem>>, vector<8x1xf32>
    tpu.vector_store %arg6[%c0_17, %c0_18], %24 {strides = array<i32>} : memref<8x1xf32, #tpu.memory_space<vmem>>, vector<8x1xf32>,
    return
  }
  func.func @transform_0(%arg0: i32, %arg1: i32) -> (i32, i32, i32) {
    %c0_i32 = arith.constant 0 : i32
    %c0_i32_0 = arith.constant 0 : i32
    return %arg0, %c0_i32, %arg1 : i32, i32, i32
  }
  func.func @transform_1(%arg0: i32, %arg1: i32) -> (i32, i32) {
    %c0_i32 = arith.constant 0 : i32
    %c0_i32_0 = arith.constant 0 : i32
    %c0_i32_1 = arith.constant 0 : i32
    return %c0_i32, %c0_i32_0 : i32, i32
  }
  func.func @transform_2(%arg0: i32, %arg1: i32) -> (i32, i32) {
    %c0_i32 = arith.constant 0 : i32
    %c0_i32_0 = arith.constant 0 : i32
    %c0_i32_1 = arith.constant 0 : i32
    return %c0_i32, %c0_i32_0 : i32, i32
  }
  func.func @transform_3(%arg0: i32, %arg1: i32) -> (i32, i32) {
    %c0_i32 = arith.constant 0 : i32
    %c0_i32_0 = arith.constant 0 : i32
    %c0_i32_1 = arith.constant 0 : i32
    return %c0_i32, %c0_i32_0 : i32, i32
  }
  func.func @transform_4(%arg0: i32, %arg1: i32) -> (i32, i32) {
    %c0_i32 = arith.constant 0 : i32
    %c0_i32_0 = arith.constant 0 : i32
    %c0_i32_1 = arith.constant 0 : i32
    return %c0_i32, %c0_i32_0 : i32, i32
  }
}

module attributes {stable_mosaic.version = 11 : i64} {
  func.func @_conv_kernel(%arg0: i32, %arg1: memref<1x4x256xf32, #tpu.memory_space<vmem>>, %arg2: memref<8x4xbf16, #tpu.memory_space<vmem>>, %arg3: memref<8x1xf32, #tpu.memory_space<vmem>>, %arg4: memref<9x8x8xbf16, #tpu.memory_space<vmem>>, %arg5: memref<8x1xf32, #tpu.memory_space<vmem>>, %arg6: memref<1x8x256xf32, #tpu.memory_space<vmem>>) attributes {dimension_semantics = [#tpu.dimension_semantics<parallel>], iteration_bounds = array<i64: 2>, scalar_prefetch = 0 : i64, scratch_operands = 0 : i64, tpu.core_type = #tpu.core_type<tc>, window_params = [{transform_indices = @transform_0, window_bounds = array<i64: 1, 4, 256>}, {pipeline_mode = #tpu.pipeline_mode<synchronous>, transform_indices = @transform_1, window_bounds = array<i64: 8, 4>}, {pipeline_mode = #tpu.pipeline_mode<synchronous>, transform_indices = @transform_2, window_bounds = array<i64: 8, 1>}, {pipeline_mode = #tpu.pipeline_mode<synchronous>, transform_indices = @transform_3, window_bounds = array<i64: 9, 8, 8>}, {pipeline_mode = #tpu.pipeline_mode<synchronous>, transform_indices = @transform_4, window_bounds = array<i64: 8, 1>}, {transform_indices = @transform_5, window_bounds = array<i64: 1, 8, 256>}]} {
    %c0 = arith.constant 0 : index
    %c0_0 = arith.constant 0 : index
    %c0_1 = arith.constant 0 : index
    %0 = vector.load %arg1[%c0, %c0_0, %c0_1] : memref<1x4x256xf32, #tpu.memory_space<vmem>>, vector<1x4x256xf32>
    %1 = vector.shape_cast %0 : vector<1x4x256xf32> to vector<4x256xf32>
    %2 = arith.truncf %1 : vector<4x256xf32> to vector<4x256xbf16>
    %c0_2 = arith.constant 0 : index
    %c0_3 = arith.constant 0 : index
    %3 = vector.load %arg2[%c0_2, %c0_3] : memref<8x4xbf16, #tpu.memory_space<vmem>>, vector<8x4xbf16>
    %cst = arith.constant dense<0.000000e+00> : vector<8x256xf32>
    %4 = tpu.matmul %3, %2, %cst {dimension_numbers = #tpu.dot_dimension_numbers<[1], [0], [0], [1], [0, 0, 1, 1], [], []>} : vector<8x4xbf16>, vector<4x256xbf16>, vector<8x256xf32> -> vector<8x256xf32>
    %c0_4 = arith.constant 0 : index
    %c0_5 = arith.constant 0 : index
    %5 = vector.load %arg3[%c0_4, %c0_5] : memref<8x1xf32, #tpu.memory_space<vmem>>, vector<8x1xf32>
    %6 = vector.broadcast %5 : vector<8x1xf32> to vector<8x256xf32>
    %7 = arith.addf %4, %6 : vector<8x256xf32>
    %cst_6 = arith.constant 0.000000e+00 : f32
    %8 = vector.broadcast %cst_6 : f32 to vector<8x256xf32>
    %9 = arith.maximumf %7, %8 : vector<8x256xf32>
    %c0_7 = arith.constant 0 : index
    %c0_8 = arith.constant 0 : index
    %10 = vector.load %arg5[%c0_7, %c0_8] : memref<8x1xf32, #tpu.memory_space<vmem>>, vector<8x1xf32>
    %11 = vector.broadcast %10 : vector<8x1xf32> to vector<8x256xf32>
    %12 = arith.addf %9, %11 : vector<8x256xf32>
    %13 = arith.truncf %12 : vector<8x256xf32> to vector<8x256xbf16>
    %cst_9 = arith.constant 0.000000e+00 : bf16
    %14 = vector.broadcast %cst_9 : bf16 to vector<8x128xbf16>
    %15 = tpu.concatenate %14, %13, %14 in 1 : vector<8x128xbf16>, vector<8x256xbf16>, vector<8x128xbf16> -> vector<8x512xbf16>
    %16 = tpu.iota {dimensions = array<i32: 1>} : vector<1x256xi32>
    %c16_i32 = arith.constant 16 : i32
    %c0_i32 = arith.constant 0 : i32
    %17 = arith.cmpi eq, %c16_i32, %c0_i32 : i32
    %c1_i32 = arith.constant 1 : i32
    %18 = arith.select %17, %c1_i32, %c16_i32 : i32
    %19 = vector.broadcast %18 : i32 to vector<1x256xi32>
    %20 = arith.remsi %16, %19 : vector<1x256xi32>
    %c0_i32_10 = arith.constant 0 : i32
    %21 = vector.broadcast %c0_i32_10 : i32 to vector<1x256xi32>
    %22 = arith.cmpi ne, %20, %21 : vector<1x256xi32>
    %c0_i32_11 = arith.constant 0 : i32
    %23 = vector.broadcast %c0_i32_11 : i32 to vector<1x256xi32>
    %24 = arith.cmpi slt, %20, %23 : vector<1x256xi32>
    %c0_i32_12 = arith.constant 0 : i32
    %25 = arith.cmpi slt, %18, %c0_i32_12 : i32
    %26 = vector.broadcast %25 : i1 to vector<1x256xi1>
    %27 = vector.broadcast %26 : vector<1x256xi1> to vector<1x256xi1>
    %28 = arith.xori %24, %27 : vector<1x256xi1>
    %29 = arith.andi %28, %22 : vector<1x256xi1>
    %30 = vector.broadcast %18 : i32 to vector<1x256xi32>
    %31 = arith.addi %20, %30 : vector<1x256xi32>
    %32 = arith.select %29, %31, %20 : vector<1x256xi1>, vector<1x256xi32>
    %c1_i32_13 = arith.constant 1 : i32
    %33 = vector.broadcast %c1_i32_13 : i32 to vector<1x256xi32>
    %34 = arith.cmpi sge, %32, %33 : vector<1x256xi32>
    %c14_i32 = arith.constant 14 : i32
    %35 = vector.broadcast %c14_i32 : i32 to vector<1x256xi32>
    %36 = arith.cmpi sle, %32, %35 : vector<1x256xi32>
    %c0_14 = arith.constant 0 : index
    %c0_15 = arith.constant 0 : index
    %c0_16 = arith.constant 0 : index
    %37 = vector.load %arg4[%c0_14, %c0_15, %c0_16] : memref<9x8x8xbf16, #tpu.memory_space<vmem>>, vector<9x8x8xbf16>
    %cst_17 = arith.constant 0.000000e+00 : f32
    %38 = vector.broadcast %cst_17 : f32 to vector<8x256xf32>
    %39 = vector.extract_strided_slice %15 {offsets = [0, 111], sizes = [8, 256], strides = [1, 1]} : vector<8x512xbf16> to vector<8x256xbf16>
    %cst_18 = arith.constant 0.000000e+00 : f32
    %40 = arith.truncf %cst_18 : f32 to bf16
    %41 = vector.shape_cast %34 : vector<1x256xi1> to vector<1x256xi1>
    %42 = vector.broadcast %41 : vector<1x256xi1> to vector<8x256xi1>
    %43 = vector.broadcast %40 : bf16 to vector<8x256xbf16>
    %44 = arith.select %42, %39, %43 : vector<8x256xi1>, vector<8x256xbf16>
    %45 = vector.extract_strided_slice %37 {offsets = [0, 0, 0], sizes = [1, 8, 8], strides = [1, 1, 1]} : vector<9x8x8xbf16> to vector<1x8x8xbf16>
    %46 = vector.shape_cast %45 : vector<1x8x8xbf16> to vector<8x8xbf16>
    %cst_19 = arith.constant dense<0.000000e+00> : vector<8x256xf32>
    %47 = tpu.matmul %46, %44, %cst_19 {dimension_numbers = #tpu.dot_dimension_numbers<[1], [0], [0], [1], [0, 0, 1, 1], [], []>} : vector<8x8xbf16>, vector<8x256xbf16>, vector<8x256xf32> -> vector<8x256xf32>
    %48 = arith.addf %38, %47 : vector<8x256xf32>
    %49 = vector.extract_strided_slice %15 {offsets = [0, 112], sizes = [8, 256], strides = [1, 1]} : vector<8x512xbf16> to vector<8x256xbf16>
    %50 = vector.extract_strided_slice %37 {offsets = [1, 0, 0], sizes = [1, 8, 8], strides = [1, 1, 1]} : vector<9x8x8xbf16> to vector<1x8x8xbf16>
    %51 = vector.shape_cast %50 : vector<1x8x8xbf16> to vector<8x8xbf16>
    %cst_20 = arith.constant dense<0.000000e+00> : vector<8x256xf32>
    %52 = tpu.matmul %51, %49, %cst_20 {dimension_numbers = #tpu.dot_dimension_numbers<[1], [0], [0], [1], [0, 0, 1, 1], [], []>} : vector<8x8xbf16>, vector<8x256xbf16>, vector<8x256xf32> -> vector<8x256xf32>
    %53 = arith.addf %48, %52 : vector<8x256xf32>
    %54 = vector.extract_strided_slice %15 {offsets = [0, 113], sizes = [8, 256], strides = [1, 1]} : vector<8x512xbf16> to vector<8x256xbf16>
    %cst_21 = arith.constant 0.000000e+00 : f32
    %55 = arith.truncf %cst_21 : f32 to bf16
    %56 = vector.shape_cast %36 : vector<1x256xi1> to vector<1x256xi1>
    %57 = vector.broadcast %56 : vector<1x256xi1> to vector<8x256xi1>
    %58 = vector.broadcast %55 : bf16 to vector<8x256xbf16>
    %59 = arith.select %57, %54, %58 : vector<8x256xi1>, vector<8x256xbf16>
    %60 = vector.extract_strided_slice %37 {offsets = [2, 0, 0], sizes = [1, 8, 8], strides = [1, 1, 1]} : vector<9x8x8xbf16> to vector<1x8x8xbf16>
    %61 = vector.shape_cast %60 : vector<1x8x8xbf16> to vector<8x8xbf16>
    %cst_22 = arith.constant dense<0.000000e+00> : vector<8x256xf32>
    %62 = tpu.matmul %61, %59, %cst_22 {dimension_numbers = #tpu.dot_dimension_numbers<[1], [0], [0], [1], [0, 0, 1, 1], [], []>} : vector<8x8xbf16>, vector<8x256xbf16>, vector<8x256xf32> -> vector<8x256xf32>
    %63 = arith.addf %53, %62 : vector<8x256xf32>
    %64 = vector.extract_strided_slice %15 {offsets = [0, 127], sizes = [8, 256], strides = [1, 1]} : vector<8x512xbf16> to vector<8x256xbf16>
    %cst_23 = arith.constant 0.000000e+00 : f32
    %65 = arith.truncf %cst_23 : f32 to bf16
    %66 = vector.shape_cast %34 : vector<1x256xi1> to vector<1x256xi1>
    %67 = vector.broadcast %66 : vector<1x256xi1> to vector<8x256xi1>
    %68 = vector.broadcast %65 : bf16 to vector<8x256xbf16>
    %69 = arith.select %67, %64, %68 : vector<8x256xi1>, vector<8x256xbf16>
    %70 = vector.extract_strided_slice %37 {offsets = [3, 0, 0], sizes = [1, 8, 8], strides = [1, 1, 1]} : vector<9x8x8xbf16> to vector<1x8x8xbf16>
    %71 = vector.shape_cast %70 : vector<1x8x8xbf16> to vector<8x8xbf16>
    %cst_24 = arith.constant dense<0.000000e+00> : vector<8x256xf32>
    %72 = tpu.matmul %71, %69, %cst_24 {dimension_numbers = #tpu.dot_dimension_numbers<[1], [0], [0], [1], [0, 0, 1, 1], [], []>} : vector<8x8xbf16>, vector<8x256xbf16>, vector<8x256xf32> -> vector<8x256xf32>
    %73 = arith.addf %63, %72 : vector<8x256xf32>
    %74 = vector.extract_strided_slice %15 {offsets = [0, 128], sizes = [8, 256], strides = [1, 1]} : vector<8x512xbf16> to vector<8x256xbf16>
    %75 = vector.extract_strided_slice %37 {offsets = [4, 0, 0], sizes = [1, 8, 8], strides = [1, 1, 1]} : vector<9x8x8xbf16> to vector<1x8x8xbf16>
    %76 = vector.shape_cast %75 : vector<1x8x8xbf16> to vector<8x8xbf16>
    %cst_25 = arith.constant dense<0.000000e+00> : vector<8x256xf32>
    %77 = tpu.matmul %76, %74, %cst_25 {dimension_numbers = #tpu.dot_dimension_numbers<[1], [0], [0], [1], [0, 0, 1, 1], [], []>} : vector<8x8xbf16>, vector<8x256xbf16>, vector<8x256xf32> -> vector<8x256xf32>
    %78 = arith.addf %73, %77 : vector<8x256xf32>
    %79 = vector.extract_strided_slice %15 {offsets = [0, 129], sizes = [8, 256], strides = [1, 1]} : vector<8x512xbf16> to vector<8x256xbf16>
    %cst_26 = arith.constant 0.000000e+00 : f32
    %80 = arith.truncf %cst_26 : f32 to bf16
    %81 = vector.shape_cast %36 : vector<1x256xi1> to vector<1x256xi1>
    %82 = vector.broadcast %81 : vector<1x256xi1> to vector<8x256xi1>
    %83 = vector.broadcast %80 : bf16 to vector<8x256xbf16>
    %84 = arith.select %82, %79, %83 : vector<8x256xi1>, vector<8x256xbf16>
    %85 = vector.extract_strided_slice %37 {offsets = [5, 0, 0], sizes = [1, 8, 8], strides = [1, 1, 1]} : vector<9x8x8xbf16> to vector<1x8x8xbf16>
    %86 = vector.shape_cast %85 : vector<1x8x8xbf16> to vector<8x8xbf16>
    %cst_27 = arith.constant dense<0.000000e+00> : vector<8x256xf32>
    %87 = tpu.matmul %86, %84, %cst_27 {dimension_numbers = #tpu.dot_dimension_numbers<[1], [0], [0], [1], [0, 0, 1, 1], [], []>} : vector<8x8xbf16>, vector<8x256xbf16>, vector<8x256xf32> -> vector<8x256xf32>
    %88 = arith.addf %78, %87 : vector<8x256xf32>
    %89 = vector.extract_strided_slice %15 {offsets = [0, 143], sizes = [8, 256], strides = [1, 1]} : vector<8x512xbf16> to vector<8x256xbf16>
    %cst_28 = arith.constant 0.000000e+00 : f32
    %90 = arith.truncf %cst_28 : f32 to bf16
    %91 = vector.shape_cast %34 : vector<1x256xi1> to vector<1x256xi1>
    %92 = vector.broadcast %91 : vector<1x256xi1> to vector<8x256xi1>
    %93 = vector.broadcast %90 : bf16 to vector<8x256xbf16>
    %94 = arith.select %92, %89, %93 : vector<8x256xi1>, vector<8x256xbf16>
    %95 = vector.extract_strided_slice %37 {offsets = [6, 0, 0], sizes = [1, 8, 8], strides = [1, 1, 1]} : vector<9x8x8xbf16> to vector<1x8x8xbf16>
    %96 = vector.shape_cast %95 : vector<1x8x8xbf16> to vector<8x8xbf16>
    %cst_29 = arith.constant dense<0.000000e+00> : vector<8x256xf32>
    %97 = tpu.matmul %96, %94, %cst_29 {dimension_numbers = #tpu.dot_dimension_numbers<[1], [0], [0], [1], [0, 0, 1, 1], [], []>} : vector<8x8xbf16>, vector<8x256xbf16>, vector<8x256xf32> -> vector<8x256xf32>
    %98 = arith.addf %88, %97 : vector<8x256xf32>
    %99 = vector.extract_strided_slice %15 {offsets = [0, 144], sizes = [8, 256], strides = [1, 1]} : vector<8x512xbf16> to vector<8x256xbf16>
    %100 = vector.extract_strided_slice %37 {offsets = [7, 0, 0], sizes = [1, 8, 8], strides = [1, 1, 1]} : vector<9x8x8xbf16> to vector<1x8x8xbf16>
    %101 = vector.shape_cast %100 : vector<1x8x8xbf16> to vector<8x8xbf16>
    %cst_30 = arith.constant dense<0.000000e+00> : vector<8x256xf32>
    %102 = tpu.matmul %101, %99, %cst_30 {dimension_numbers = #tpu.dot_dimension_numbers<[1], [0], [0], [1], [0, 0, 1, 1], [], []>} : vector<8x8xbf16>, vector<8x256xbf16>, vector<8x256xf32> -> vector<8x256xf32>
    %103 = arith.addf %98, %102 : vector<8x256xf32>
    %104 = vector.extract_strided_slice %15 {offsets = [0, 145], sizes = [8, 256], strides = [1, 1]} : vector<8x512xbf16> to vector<8x256xbf16>
    %cst_31 = arith.constant 0.000000e+00 : f32
    %105 = arith.truncf %cst_31 : f32 to bf16
    %106 = vector.shape_cast %36 : vector<1x256xi1> to vector<1x256xi1>
    %107 = vector.broadcast %106 : vector<1x256xi1> to vector<8x256xi1>
    %108 = vector.broadcast %105 : bf16 to vector<8x256xbf16>
    %109 = arith.select %107, %104, %108 : vector<8x256xi1>, vector<8x256xbf16>
    %110 = vector.extract_strided_slice %37 {offsets = [8, 0, 0], sizes = [1, 8, 8], strides = [1, 1, 1]} : vector<9x8x8xbf16> to vector<1x8x8xbf16>
    %111 = vector.shape_cast %110 : vector<1x8x8xbf16> to vector<8x8xbf16>
    %cst_32 = arith.constant dense<0.000000e+00> : vector<8x256xf32>
    %112 = tpu.matmul %111, %109, %cst_32 {dimension_numbers = #tpu.dot_dimension_numbers<[1], [0], [0], [1], [0, 0, 1, 1], [], []>} : vector<8x8xbf16>, vector<8x256xbf16>, vector<8x256xf32> -> vector<8x256xf32>
    %113 = arith.addf %103, %112 : vector<8x256xf32>
    %cst_33 = arith.constant 0.000000e+00 : f32
    %114 = vector.broadcast %cst_33 : f32 to vector<8x256xf32>
    %115 = arith.maximumf %113, %114 : vector<8x256xf32>
    %c0_34 = arith.constant 0 : index
    %c0_35 = arith.constant 0 : index
    %c0_36 = arith.constant 0 : index
    %116 = vector.load %arg6[%c0_34, %c0_35, %c0_36] : memref<1x8x256xf32, #tpu.memory_space<vmem>>, vector<1x8x256xf32>
    %117 = vector.shape_cast %116 : vector<1x8x256xf32> to vector<8x256xf32>
    %118 = vector.shape_cast %115 : vector<8x256xf32> to vector<1x8x256xf32>
    tpu.vector_store %arg6[%c0_34, %c0_35, %c0_36], %118 {strides = array<i32>} : memref<1x8x256xf32, #tpu.memory_space<vmem>>, vector<1x8x256xf32>,
    return
  }
  func.func @transform_0(%arg0: i32) -> (i32, i32, i32) {
    %c0_i32 = arith.constant 0 : i32
    %c0_i32_0 = arith.constant 0 : i32
    %c0_i32_1 = arith.constant 0 : i32
    return %arg0, %c0_i32, %c0_i32_0 : i32, i32, i32
  }
  func.func @transform_1(%arg0: i32) -> (i32, i32) {
    %c0_i32 = arith.constant 0 : i32
    %c0_i32_0 = arith.constant 0 : i32
    %c0_i32_1 = arith.constant 0 : i32
    return %c0_i32, %c0_i32_0 : i32, i32
  }
  func.func @transform_2(%arg0: i32) -> (i32, i32) {
    %c0_i32 = arith.constant 0 : i32
    %c0_i32_0 = arith.constant 0 : i32
    %c0_i32_1 = arith.constant 0 : i32
    return %c0_i32, %c0_i32_0 : i32, i32
  }
  func.func @transform_3(%arg0: i32) -> (i32, i32, i32) {
    %c0_i32 = arith.constant 0 : i32
    %c0_i32_0 = arith.constant 0 : i32
    %c0_i32_1 = arith.constant 0 : i32
    %c0_i32_2 = arith.constant 0 : i32
    return %c0_i32, %c0_i32_0, %c0_i32_1 : i32, i32, i32
  }
  func.func @transform_4(%arg0: i32) -> (i32, i32) {
    %c0_i32 = arith.constant 0 : i32
    %c0_i32_0 = arith.constant 0 : i32
    %c0_i32_1 = arith.constant 0 : i32
    return %c0_i32, %c0_i32_0 : i32, i32
  }
  func.func @transform_5(%arg0: i32) -> (i32, i32, i32) {
    %c0_i32 = arith.constant 0 : i32
    %c0_i32_0 = arith.constant 0 : i32
    %c0_i32_1 = arith.constant 0 : i32
    return %arg0, %c0_i32, %c0_i32_0 : i32, i32, i32
  }
}

</mosaic_0001>

<bundles_post_ra>
// kernel: vgg_block.3
= control target key start
LH: loop header
LB: loop body
LE: loop exit
PB: predicated region body
PF: predicated region fallthrough
CT: control target
= control target key end

     0   :  { %s315_s9 = smov 0   ;;  %s317_s10 = smov 0   ;;  %s363_s0 = inlined_call_operand.vmem [shape: f32[2,4,256], index: 0, kind: input, shape index: {}]   ;;  %s364_s1 = inlined_call_operand.vmem [shape: f32[4,1], index: 1, kind: output, shape index: {0}]   ;;  %s365_s2 = inlined_call_operand.vmem [shape: f32[4,1], index: 2, kind: output, shape index: {1}]  }
   0x1   :  { %s319_s11 = smov 0  }
   0x2 LB: > { %s25_s12 = sadd.s32 1, %s293_s10  ;;  %p241_p0 = scmp.ge.s32.totalorder %s297_s11, 1  ;;  %s297_s11 = sphi %s319_s11, %s13_s11   ;;  %s293_s10 = sphi %s317_s10, %s367_s10   ;;  %s289_s9 = sphi %s315_s9, %s366_s9  }
   0x3   : > { %p27_p1 = scmp.ge.s32.totalorder %s25_s12, 2  ;;  %p124_p2 = scmp.lt.s32.totalorder %s297_s11, 3 }
   0x5   : > { %s369_s12 = smov (%p27_p1, %s25_s12), 0  ;;  %p125_p3 = pnand %p241_p0, %p124_p2 }
   0x6   : > { %p146_p4 = scmp.lt.s32.totalorder (!%p125_p3), %s289_s9, 1  ;;  %p155_p5 = scmp.eq.s32.totalorder (!%p125_p3), %s289_s9, 0 }
   0x7   : > { %128 = sbr.rel (%p125_p3) target bundleno = 176 (0xb0), region = 24 }
   0xe   : > { %s371_s9 = smov (!%p146_p4, %s289_s9), 1  ;;  %160 = sbr.rel (!%p155_p5) target bundleno = 21 (0x15), region = 28 }
   0xf   : > { %s247_s13 = sshll.u32 %s371_s9, 3  ;;  %vm161_vm0 = vcmask (%p155_p5), 3072   ;;  %v299_v0 = vmov (%p155_p5), 0.0  }
  0x10   : > { %s153_s16 = scalar_lea.vmem %s363_s0, %s247_s13  ;;  %162 = vst.msk [vmem:[%s364_s1] sm:$0xf] (%p155_p5), %vm161_vm0, %v299_v0  ;;  %163 = vst.msk [vmem:[%s365_s2] sm:$0xf] (%p155_p5), %vm161_vm0, %v299_v0 }
  0x15 PF: > { %v164_v1 = vld [vmem:[%s153_s16] sm:$0xff]  ;;  %vm169_vm1 = vcmask 1043456   ;;  %vm176_vm2 = vcmask 3072  }
  0x16   : > { %v167_v2 = vcombine.high %v164_v1, %v164_v1  ;;  %v170_v3 = vsel %vm169_vm1, %v164_v1, 0.0  ;;  %v179_v4 = vmul.f32 %v164_v1, %v164_v1 }
  0x17   : > { %v165_v11 = vld [vmem:[%s364_s1] sm:$0xf] }
  0x18   : > { %v171_v5 = vsel %vm169_vm1, %v167_v2, 0.0  ;;  %v181_v6 = vcombine.high %v179_v4, %v179_v4  ;;  %v183_v7 = vsel %vm169_vm1, %v179_v4, 0.0  ;;  %v178_v14 = vld [vmem:[%s365_s2] sm:$0xf] }
  0x19   : > { %v172_v8 = vadd.f32 %v171_v5, %v170_v3 }
  0x1a   : > { %v184_v9 = vsel %vm169_vm1, %v181_v6, 0.0 }
  0x1b   : > { %173 = vadd.xlane.f32.xlu0 %v172_v8  ;;  %v185_v10 = vadd.f32 %v184_v9, %v183_v7 }
  0x1f   : > { %186 = vadd.xlane.f32.xlu0 %v185_v10 }
  0xa8   : > { %v174_v12 = vpop.xlane.xlu0 %173 }
  0xa9   : > { %v175_v13 = vadd.f32 %v174_v12, %v165_v11 }
  0xab   : > { %177 = vst.msk [vmem:[%s364_s1] sm:$0xf] %vm176_vm2, %v175_v13 }
  0xac   : > { %v187_v15 = vpop.xlane.xlu0 %186 }
  0xad   : > { %v188_v16 = vadd.f32 %v187_v15, %v178_v14 }
  0xaf   : > { %189 = vst.msk [vmem:[%s365_s2] sm:$0xf] %vm176_vm2, %v188_v16 }
  0xb0 PF: > { %s13_s11 = sadd.s32 1, %s297_s11   ;;  %s366_s9 = smov %s293_s10 }
  0xb1   : > { %p10_p6 = scmp.ge.s32.totalorder %s13_s11, 4   ;;  %s367_s10 = smov %s369_s12 }
  0xb3   :  { %12 = sbr.rel (!%p10_p6) target bundleno = 2 (0x2), region = 62 }

// kernel: vgg_block.4
= control target key start
LH: loop header
LB: loop body
LE: loop exit
PB: predicated region body
PF: predicated region fallthrough
CT: control target
= control target key end

     0   :  { %s441_s15 = smov 0   ;;  %s443_s16 = smov 0   ;;  %s495_s0 = inlined_call_operand.vmem [shape: f32[2,4,256], index: 0, kind: input, shape index: {}]   ;;  %s496_s1 = inlined_call_operand.vmem [shape: bf16[8,4], index: 1, kind: input, shape index: {}]   ;;  %s497_s2 = inlined_call_operand.vmem [shape: f32[8,1], index: 2, kind: input, shape index: {}]   ;;  %s498_s3 = inlined_call_operand.vmem [shape: f32[8,1], index: 3, kind: output, shape index: {0}]   ;;  %s499_s4 = inlined_call_operand.vmem [shape: f32[8,1], index: 4, kind: output, shape index: {1}]  }
   0x1   :  { %s445_s17 = smov 0  }
   0x2 LB: > { %s27_s18 = sadd.s32 1, %s408_s16  ;;  %p352_p0 = scmp.ge.s32.totalorder %s412_s17, 1  ;;  %s412_s17 = sphi %s445_s17, %s15_s17   ;;  %s408_s16 = sphi %s443_s16, %s501_s16   ;;  %s404_s15 = sphi %s441_s15, %s500_s15  }
   0x3   : > { %p29_p1 = scmp.ge.s32.totalorder %s27_s18, 2  ;;  %p174_p2 = scmp.lt.s32.totalorder %s412_s17, 3 }
   0x5   : > { %s503_s18 = smov (%p29_p1, %s27_s18), 0  ;;  %p175_p3 = pnand %p352_p0, %p174_p2 }
   0x6   : > { %p200_p4 = scmp.lt.s32.totalorder (!%p175_p3), %s404_s15, 1  ;;  %p210_p5 = scmp.eq.s32.totalorder (!%p175_p3), %s404_s15, 0 }
   0x7   : > { %178 = sbr.rel (%p175_p3) target bundleno = 396 (0x18c), region = 32 }
   0xe   : > { %s505_s15 = smov (!%p200_p4, %s404_s15), 1  ;;  %215 = sbr.rel (!%p210_p5) target bundleno = 21 (0x15), region = 36 }
   0xf   : > { %s360_s19 = sshll.u32 %s505_s15, 3  ;;  %vm216_vm0 = vcmask (%p210_p5), 7168   ;;  %v414_v0 = vmov (%p210_p5), 0.0  }
  0x10   : > { %s207_s22 = scalar_lea.vmem %s495_s0, %s360_s19  ;;  %217 = vst.msk [vmem:[%s498_s3] sm:$0xff] (%p210_p5), %vm216_vm0, %v414_v0  ;;  %218 = vst.msk [vmem:[%s499_s4] sm:$0xff] (%p210_p5), %vm216_vm0, %v414_v0 }
  0x15 PF: > { %v219_v1 = vld [vmem:[%s207_s22] sm:$0xff]  ;;  %vm236_vm1 = vcmask 1041408   ;;  %v415_v4 = vmov 0   ;;  %vm232_vm2 = vcmask 31744   ;;  %vm291_vm3 = vcmask 7168  }
  0x16   : > { %v221_v2 = vcombine.high %v219_v1, %v219_v1  ;;  %v223_v3 = vpack.c.bf16 %v219_v1, %v219_v1  ;;  %275 = vmatprep.mubr.bf16.mxu0 %v415_v4  ;;  %388 = vset.pattern.permute.xlu0 %v415_v4  ;;  %v226_v5 = vld [vmem:[%s497_s2] sm:$0xff] }
  0x17   : > { %229 = vperm.xlu0 %388, %v226_v5   ;;  %v225_v8 = vld [vmem:[%s496_s1] sm:$0xf] }
  0x18   : > { %v224_v6 = vpack.c.bf16 %v221_v2, %v221_v2  ;;  %v238_v7 = vsel %vm236_vm1, %v223_v3, 0  ;;  %v286_v22 = vld [vmem:[%s498_s3] sm:$0xff] }
  0x19   : > { %v293_v24 = vld [vmem:[%s499_s4] sm:$0xff] }
  0x1a   : > { %356 = vmatprep.subr.msk.bf16.mxu0 %vm236_vm1, %v224_v6 }
  0x1b   : > { %244 = vmatpush1.bf16.msra.mxu0 %v238_v7 }
  0x1e   : > { %357 = vmatmul.mubr.msk.bf16.vlgmr.msra.gmra.mrb[0].mxu0 %vm232_vm2, %v225_v8 }
  0x96   : > { %v230_v9 = vpop.permute.xlu0 %229 }
  0xf1   : > { %v277_v10 = vpop.f32.mrb[0].mxu0 }
  0xf2   : > { %v278_v11 = vadd.f32 %v277_v10, %v230_v9  ;;  %v279_v12 = vpop.f32.mrb[1].mxu0 }
  0xf3   : > { %v280_v13 = vadd.f32 %v279_v12, %v230_v9  ;;  %v281_v14 = vpop.f32.mrb[2].mxu0 }
  0xf4   : > { %v284_v15 = vmax.f32 %v278_v11, 0.0  ;;  %v282_v16 = vpop.f32.mrb[3].mxu0 }
  0xf5   : > { %v285_v17 = vmax.f32 %v280_v13, 0.0 }
  0xf6   : > { %v294_v18 = vmul.f32 %v284_v15, %v284_v15 }
  0xf7   : > { %v287_v19 = vadd.f32 %v285_v17, %v284_v15  ;;  %v295_v20 = vmul.f32 %v285_v17, %v285_v17 }
  0xf9   : > { %288 = vadd.xlane.f32.xlu0 %v287_v19  ;;  %v296_v21 = vadd.f32 %v295_v20, %v294_v18 }
  0xfb   : > { %297 = vadd.xlane.f32.xlu1 %v296_v21 }
 0x186   : > { %v289_v23 = vpop.xlane.xlu0 %288 }
 0x187   : > { %v290_v25 = vadd.f32 %v289_v23, %v286_v22 }
 0x188   : > { %v298_v26 = vpop.xlane.xlu1 %297 }
 0x189   : > { %292 = vst.msk [vmem:[%s498_s3] sm:$0xff] %vm291_vm3, %v290_v25  ;;  %v299_v27 = vadd.f32 %v298_v26, %v293_v24 }
 0x18b   : > { %300 = vst.msk [vmem:[%s499_s4] sm:$0xff] %vm291_vm3, %v299_v27 }
 0x18c PF: > { %s15_s17 = sadd.s32 1, %s412_s17   ;;  %s500_s15 = smov %s408_s16 }
 0x18d   : > { %p12_p6 = scmp.ge.s32.totalorder %s15_s17, 4   ;;  %s501_s16 = smov %s503_s18 }
 0x18f   :  { %14 = sbr.rel (!%p12_p6) target bundleno = 2 (0x2), region = 70 }

// kernel: vgg_block.5
= control target key start
LH: loop header
LB: loop body
LE: loop exit
PB: predicated region body
PF: predicated region fallthrough
CT: control target
= control target key end

     0   :  { %s1168_s18 = smov 0   ;;  %s1345_s0 = inlined_call_operand.vmem [shape: f32[2,4,256], index: 0, kind: input, shape index: {}]   ;;  %s1346_s1 = inlined_call_operand.vmem [shape: bf16[8,4], index: 1, kind: input, shape index: {}]   ;;  %s1347_s2 = inlined_call_operand.vmem [shape: f32[8,1], index: 2, kind: input, shape index: {}]   ;;  %s1348_s3 = inlined_call_operand.vmem [shape: bf16[9,8,8], index: 3, kind: input, shape index: {}]   ;;  %s1349_s4 = inlined_call_operand.vmem [shape: f32[8,1], index: 4, kind: input, shape index: {}]   ;;  %s1350_s5 = inlined_call_operand.vmem [shape: f32[2,8,256], index: 5, kind: output, shape index: {}]  }
   0x1 LB: > { %s1039_s19 = sadd.s32 4294967295, %s1127_s18   ;;  %p1043_p0 = scmp.ge.s32.totalorder %s1127_s18, 1  ;;  %s1127_s18 = sphi %s1168_s18, %s15_s18  }
   0x2   : > { %p187_p1 = scmp.lt.s32.totalorder %s1127_s18, 3 }
   0x4   : > { %p188_p2 = pnand %p1043_p0, %p187_p1 }
   0x5   : > { %p215_p3 = scmp.lt.s32.totalorder (!%p188_p2), %s1039_s19, 1  ;;  %v305_v0 = vlaneseq (!%p188_p2)  ;;  %v1129_v1 = vmov (!%p188_p2), 0   ;;  %v235_v2 = vld [vmem:[%s1347_s2] sm:$0xff] (!%p188_p2)  ;;  %vm245_vm0 = vcmask (!%p188_p2), 1041408   ;;  %vm241_vm7 = vcmask (!%p188_p2), 31744   ;;  %s1130_s30 = smov (!%p188_p2), 1  }
   0x6   : > { %191 = sbr.rel (%p188_p2) target bundleno = 624 (0x270), region = 40  ;;  %284 = vmatprep.mubr.bf16.mxu0 (!%p188_p2), %v1129_v1  ;;  %1119 = vset.pattern.permute.xlu0 (!%p188_p2), %v1129_v1  ;;  %v295_v4 = vld [vmem:[%s1349_s4] sm:$0xff] (!%p188_p2)  ;;  %s1131_s6 = smov (!%p188_p2), 111   ;;  %vm599_vm8 = vcmask (!%p188_p2), 7168   ;;  %vm385_vm9 = vcmask (!%p188_p2), 1043456   ;;  %vm363_vm10 = vcmask (!%p188_p2), 908288  }
   0x7   : > { %238 = vperm.xlu0 (!%p188_p2), %1119, %v235_v2   ;;  %v306_v3 = vand.u32 (!%p188_p2), 127, %v305_v0  ;;  %695 = vmatprep.mubr.bf16.mxu1 (!%p188_p2), %v1129_v1  ;;  %v352_v5 = vshrl.u32 (!%p188_p2), %v305_v0, 7  ;;  %v234_v19 = vld [vmem:[%s1346_s1] sm:$0xf] (!%p188_p2)  ;;  %s1132_s7 = smov (!%p188_p2), 15   ;;  %s1133_s8 = smov (!%p188_p2), 113  }
   0x8   : > { %s1134_s9 = smov (!%p188_p2), 127   ;;  %s1135_s10 = smov (!%p188_p2), 17   ;;  %v340_v44 = vld [vmem:[%s1348_s3 + $0x10] sm:$0xf] (!%p188_p2)  ;;  %vm381_vm13 = vcmask (!%p188_p2), 64512   ;;  %vm526_vm15 = vcmask (!%p188_p2), 121856  }
   0x9   : > { %v307_v6 = vadd.s32 (!%p188_p2), 128, %v306_v3  ;;  %v312_v7 = vand.u32 (!%p188_p2), 15, %v306_v3  ;;  %v353_v12 = vsub.s32 (!%p188_p2), 0, %v352_v5  ;;  %v357_v15 = vsub.s32 (!%p188_p2), 4, %v352_v5  ;;  %s1136_s11 = smov (!%p188_p2), 16   ;;  %s1137_s14 = smov (!%p188_p2), 112  }
   0xb   : > { %298 = vperm.xlu0 (!%p188_p2), %1119, %v295_v4   ;;  %v319_v9 = vand.u32 (!%p188_p2), 15, %v307_v6  ;;  %vm334_vm1 = vcmp.le.s32.totalorder (!%p188_p2), %v312_v7, 14  ;;  %vm332_vm2 = vcmp.ge.s32.totalorder (!%p188_p2), %v312_v7, 1 }
   0xd   : > { %s1352_s19 = smov (!%p215_p3, %s1039_s19), 1  ;;  %vm335_vm3 = vcmp.le.s32.totalorder %v319_v9, 14  ;;  %vm333_vm4 = vcmp.ge.s32.totalorder %v319_v9, 1 }
   0xe   : > { %s1070_s24 = sshll.u32 %s1352_s19, 3  ;;  %vm498_vm5 = vmpackc.low %vm335_vm3, %vm334_vm1 }
   0xf   : > { %s219_s27 = scalar_lea.vmem %s1345_s0, %s1070_s24  ;;  %v499_v16 = vsel %vm498_vm5, 65537, %v1129_v1  ;;  %vm349_vm6 = vmpackc.low %vm333_vm4, %vm332_vm2  ;;  %vm512_vm2 = vcmask 924672   ;;  %vm585_vm5 = vcmask 1039360  }
  0x10   : > { %v228_v8 = vld [vmem:[%s219_s27] sm:$0xff]  ;;  %v503_v17 = vrot.slane %v499_v16, %v353_v12  ;;  %v350_v18 = vsel %vm349_vm6, 65537, %v1129_v1  ;;  %v507_v21 = vrot.slane %v499_v16, %v357_v15 }
  0x11   : > { %v230_v10 = vcombine.high %v228_v8, %v228_v8  ;;  %v232_v11 = vpack.c.bf16 %v228_v8, %v228_v8  ;;  %v354_v20 = vrot.slane %v350_v18, %v353_v12  ;;  %v358_v22 = vrot.slane %v350_v18, %v357_v15 }
  0x12   : > { %706 = vrot.lane.b32.xlu1 %v503_v17, %s1130_s30 }
  0x13   : > { %v233_v13 = vpack.c.bf16 %v230_v10, %v230_v10  ;;  %v247_v14 = vsel %vm245_vm0, %v232_v11, 0  ;;  %359 = vrot.lane.b32.xlu0 %v354_v20, %s1131_s6 }
  0x15   : > { %1048 = vmatprep.subr.msk.bf16.mxu0 %vm245_vm0, %v233_v13 }
  0x16   : > { %253 = vmatpush1.bf16.msra.mxu0 %v247_v14  ;;  %708 = vrot.lane.b32.xlu1 %v507_v21, %s1130_s30  ;;  %v337_v14 = vld [vmem:[%s1348_s3 + $0x4] sm:$0xf] }
  0x17   : > { %777 = vrot.lane.b32.xlu0 %v354_v20, %s1132_s7 }
  0x19   : > { %1049 = vmatmul.mubr.msk.bf16.vlgmr.msra.gmra.mrb[0].mxu0 %vm241_vm7, %v234_v19 }
  0x1a   : > { %424 = vmatprep.mubr.bf16.mxu0 %v1129_v1  ;;  %361 = vrot.lane.b32.xlu1 %v358_v22, %s1131_s6 }
  0x1b   : > { %508 = vrot.lane.b32.xlu0 %v503_v17, %s1133_s8 }
  0x1e   : > { %779 = vrot.lane.b32.xlu1 %v358_v22, %s1132_s7 }
  0x1f   : > { %581 = vrot.lane.b32.xlu0 %v354_v20, %s1134_s9  ;;  %v341_v20 = vld [vmem:[%s1348_s3 + $0x14] sm:$0xf] }
  0x22   : > { %510 = vrot.lane.b32.xlu1 %v507_v21, %s1133_s8 }
  0x23   : > { %909 = vrot.lane.b32.xlu0 %v503_v17, %s1135_s10 }
  0x26   : > { %583 = vrot.lane.b32.xlu1 %v358_v22, %s1134_s9 }
  0x27   : > { %372 = vrot.lane.b32.xlu0 %v1129_v1, %s1136_s11 }
  0x2a   : > { %911 = vrot.lane.b32.xlu1 %v507_v21, %s1135_s10 }
  0x2e   : > { %721 = vrot.lane.b32.xlu1 %v1129_v1, %s1134_s9 }
  0x84   : > { %v707_v23 = vpop.permute.xlu1 %706 }
  0x85   : > { %vm711_vm11 = vcmp.ne.s16.totalorder %v707_v23, 0 }
  0x86   : > { %v239_v24 = vpop.permute.xlu0 %238 }
  0x88   : > { %v709_v28 = vpop.permute.xlu1 %708 }
  0x89   : > { %v710_v37 = vsel %vm599_vm8, %v707_v23, %v709_v28  ;;  %v336_v28 = vld [vmem:[%s1348_s3] sm:$0xf] }
  0x8a   : > { %v299_v31 = vpop.permute.xlu0 %298  ;;  %vm712_vm12 = vcmp.ne.s16.totalorder %v710_v37, 0 }
  0x8c   : > { %v362_v40 = vpop.permute.xlu1 %361 }
  0x8d   : > { %vm366_vm1 = vcmp.ne.s16.totalorder %v362_v40, 0 }
  0x8e   : > { %v360_v41 = vpop.permute.xlu0 %359 }
  0x8f   : > { %v364_v43 = vsel %vm363_vm10, %v360_v41, %v362_v40 }
  0x90   : > { %vm365_vm14 = vcmp.ne.s16.totalorder %v364_v43, 0  ;;  %v780_v47 = vpop.permute.xlu1 %779 }
  0x92   : > { %v778_v48 = vpop.permute.xlu0 %777 }
  0x93   : > { %vm782_vm0 = vcmp.ne.s16.totalorder %v778_v48, 0  ;;  %v781_v50 = vsel %vm526_vm15, %v778_v48, %v780_v47  ;;  %v338_v47 = vld [vmem:[%s1348_s3 + $0x8] sm:$0xf]  ;;  %v343_v48 = vld [vmem:[%s1348_s3 + $0x1c] sm:$0xf] }
  0x94   : > { %v511_v52 = vpop.permute.xlu1 %510  ;;  %vm783_vm3 = vcmp.ne.s16.totalorder %v781_v50, 0 }
  0x95   : > { %vm515_vm6 = vcmp.ne.s16.totalorder %v511_v52, 0 }
  0x96   : > { %v509_v53 = vpop.permute.xlu0 %508 }
  0x97   : > { %v513_v55 = vsel %vm512_vm2, %v509_v53, %v511_v52 }
  0x98   : > { %vm514_vm4 = vcmp.ne.s16.totalorder %v513_v55, 0  ;;  %v584_v59 = vpop.permute.xlu1 %583 }
  0x9a   : > { %v582_v58 = vpop.permute.xlu0 %581 }
  0x9b   : > { %v586_v60 = vsel %vm585_vm5, %v582_v58, %v584_v59 }
  0x9c   : > { %vm587_vm7 = vcmp.ne.s16.totalorder %v586_v60, 0  ;;  %v912_v63 = vpop.permute.xlu1 %911  ;;  %v344_v60 = vld [vmem:[%s1348_s3 + $0x20] sm:$0xf] }
  0x9e   : > { %v910_v62 = vpop.permute.xlu0 %909 }
  0xa0   : > { %v722_v6 = vpop.permute.xlu1 %721 }
  0xa2   : > { %v373_v7 = vpop.permute.xlu0 %372 }
  0xec   : > { %v286_v25 = vpop.f32.mrb[0].mxu0 }
  0xed   : > { %v287_v26 = vadd.f32 %v286_v25, %v239_v24  ;;  %v288_v27 = vpop.f32.mrb[1].mxu0 }
  0xee   : > { %v289_v29 = vadd.f32 %v288_v27, %v239_v24  ;;  %v290_v30 = vpop.f32.mrb[2].mxu0 }
  0xef   : > { %v293_v32 = vmax.f32 %v287_v26, 0.0  ;;  %v291_v33 = vpop.f32.mrb[3].mxu0 }
  0xf0   : > { %v294_v34 = vmax.f32 %v289_v29, 0.0 }
  0xf1   : > { %v301_v35 = vadd.f32 %v299_v31, %v293_v32 }
  0xf2   : > { %v302_v36 = vadd.f32 %v299_v31, %v294_v34  ;;  %v342_v34 = vld [vmem:[%s1348_s3 + $0x18] sm:$0xf] }
  0xf3   : > { %v1215_v38 = vpack.c.bf16 %v301_v35, %v301_v35 }
  0xf4   : > { %v1217_v39 = vpack.c.bf16 %v302_v36, %v302_v36 }
  0xf5   : > { %374 = vrot.lane.b32.xlu1 %v1215_v38, %s1136_s11  ;;  %v658_v42 = vsel %vm385_vm9, %v1215_v38, 0  ;;  %v713_v45 = vsel %vm711_vm11, %v1215_v38, 0  ;;  %v367_v49 = vsel %vm365_vm14, %v1215_v38, 0  ;;  %v784_v51 = vsel %vm782_vm0, %v1215_v38, 0 }
  0xf6   : > { %376 = vrot.lane.b32.xlu0 %v1217_v39, %s1136_s11  ;;  %1058 = vmatprep.subr.msk.bf16.mxu1 %vm385_vm9, %v1217_v39  ;;  %v714_v46 = vsel %vm712_vm12, %v1217_v39, 0  ;;  %v368_v54 = vsel %vm366_vm1, %v1217_v39, 0  ;;  %v785_v56 = vsel %vm783_vm3, %v1217_v39, 0  ;;  %v516_v57 = vsel %vm514_vm4, %v1215_v38, 0 }
  0xf7   : > { %664 = vmatpush1.bf16.msra.mxu1 %v658_v42  ;;  %v517_v61 = vsel %vm515_vm6, %v1217_v39, 0  ;;  %vm441_vm11 = vcmask 138240   ;;  %v589_v0 = vsel %vm587_vm7, %v1215_v38, 0  ;;  %vm914_vm12 = vcmp.ne.s16.totalorder %v910_v62, 0 }
  0xf8   : > { %vm588_vm14 = vcmp.ne.s16.totalorder %v584_v59, 0  ;;  %v913_v2 = vsel %vm441_vm11, %v910_v62, %v912_v63  ;;  %v916_v3 = vsel %vm914_vm12, %v1215_v38, 0  ;;  %vm378_vm1 = vcmask 130048  }
  0xf9   : > { %717 = vrot.lane.b32.xlu1 %v713_v45, %s1134_s9  ;;  %v590_v4 = vsel %vm588_vm14, %v1217_v39, 0  ;;  %vm915_vm0 = vcmp.ne.s16.totalorder %v913_v2, 0  ;;  %vm854_vm3 = vcmask 916480  }
  0xfa   : > { %719 = vrot.lane.b32.xlu0 %v714_v46, %s1134_s9  ;;  %1059 = vmatmul.mubr.msk.bf16.vlgmr.msra.gmra.mrb[0].mxu1 %vm381_vm13, %v340_v44  ;;  %v917_v5 = vsel %vm915_vm0, %v1217_v39, 0 }
  0xfb   : > { %766 = vmatprep.mubr.bf16.mxu1 %v1129_v1 }
  0xfd   : > { %437 = vrot.lane.b32.xlu1 %v367_v49, %s1135_s10 }
  0xfe   : > { %435 = vrot.lane.b32.xlu0 %v1129_v1, %s1135_s10 }
 0x101   : > { %788 = vrot.lane.b32.xlu1 %v784_v51, %s1133_s8 }
 0x102   : > { %439 = vrot.lane.b32.xlu0 %v368_v54, %s1135_s10 }
 0x105   : > { %792 = vrot.lane.b32.xlu1 %v1129_v1, %s1133_s8 }
 0x106   : > { %790 = vrot.lane.b32.xlu0 %v785_v56, %s1133_s8  ;;  %s1071_s8 = sshll.u32 %s1352_s19, 4 }
 0x107   : > { %s224_s11 = scalar_lea.vmem %s1350_s5, %s1071_s8 }
 0x109   : > { %522 = vrot.lane.b32.xlu1 %v516_v57, %s1132_s7 }
 0x10a   : > { %520 = vrot.lane.b32.xlu0 %v1129_v1, %s1132_s7 }
 0x10d   : > { %848 = vrot.lane.b32.xlu1 %v1215_v38, %s1137_s14 }
 0x10e   : > { %850 = vrot.lane.b32.xlu0 %v1217_v39, %s1137_s14 }
 0x111   : > { %852 = vrot.lane.b32.xlu1 %v1129_v1, %s1137_s14 }
 0x112   : > { %524 = vrot.lane.b32.xlu0 %v517_v61, %s1132_s7 }
 0x115   : > { %595 = vrot.lane.b32.xlu1 %v589_v0, %s1130_s30 }
 0x116   : > { %593 = vrot.lane.b32.xlu0 %v1129_v1, %s1130_s30 }
 0x119   : > { %920 = vrot.lane.b32.xlu1 %v916_v3, %s1131_s6 }
 0x11a   : > { %597 = vrot.lane.b32.xlu0 %v590_v4, %s1130_s30 }
 0x11d   : > { %924 = vrot.lane.b32.xlu1 %v1129_v1, %s1131_s6 }
 0x11e   : > { %922 = vrot.lane.b32.xlu0 %v917_v5, %s1131_s6 }
 0x167   : > { %v375_v8 = vpop.permute.xlu1 %374 }
 0x168   : > { %v379_v9 = vsel %vm378_vm1, %v373_v7, %v375_v8  ;;  %v377_v10 = vpop.permute.xlu0 %376 }
 0x169   : > { %v387_v11 = vsel %vm385_vm9, %v379_v9, 0  ;;  %v380_v12 = vsel %vm378_vm1, %v375_v8, %v377_v10 }
 0x16a   : > { %1050 = vmatprep.subr.msk.bf16.mxu0 %vm385_vm9, %v380_v12 }
 0x16b   : > { %393 = vmatpush1.bf16.msra.mxu0 %v387_v11  ;;  %v718_v13 = vpop.permute.xlu1 %717 }
 0x16c   : > { %v720_v15 = vpop.permute.xlu0 %719 }
 0x16d   : > { %v723_v16 = vsel %vm585_vm5, %v718_v13, %v720_v15  ;;  %v724_v17 = vsel %vm585_vm5, %v720_v15, %v722_v6 }
 0x16e   : > { %v729_v18 = vsel %vm385_vm9, %v723_v16, 0  ;;  %1060 = vmatprep.subr.msk.bf16.mxu1 %vm385_vm9, %v724_v17  ;;  %1051 = vmatmul.mubr.msk.bf16.vlgmr.msra.gmra.mrb[4].mxu0 %vm381_vm13, %v337_v14 }
 0x16f   : > { %735 = vmatpush1.bf16.msra.mxu1 %v729_v18  ;;  %v438_v19 = vpop.permute.xlu1 %437  ;;  %485 = vmatprep.mubr.bf16.mxu0 %v1129_v1 }
 0x170   : > { %v436_v21 = vpop.permute.xlu0 %435 }
 0x171   : > { %v442_v22 = vsel %vm441_vm11, %v436_v21, %v438_v19 }
 0x172   : > { %1061 = vmatmul.mubr.msk.bf16.vlgmr.msra.gmra.mrb[0].mxu1 %vm381_vm13, %v341_v20  ;;  %v448_v26 = vsel %vm385_vm9, %v442_v22, 0 }
 0x173   : > { %v789_v23 = vpop.permute.xlu1 %788  ;;  %837 = vmatprep.mubr.bf16.mxu1 %v1129_v1 }
 0x174   : > { %v440_v24 = vpop.permute.xlu0 %439 }
 0x175   : > { %v443_v25 = vsel %vm441_vm11, %v438_v19, %v440_v24 }
 0x176   : > { %1052 = vmatprep.subr.msk.bf16.mxu0 %vm385_vm9, %v443_v25 }
 0x177   : > { %454 = vmatpush1.bf16.msra.mxu0 %v448_v26  ;;  %v793_v27 = vpop.permute.xlu1 %792 }
 0x178   : > { %v791_v29 = vpop.permute.xlu0 %790 }
 0x179   : > { %v794_v30 = vsel %vm512_vm2, %v789_v23, %v791_v29  ;;  %v795_v31 = vsel %vm512_vm2, %v791_v29, %v793_v27 }
 0x17a   : > { %v800_v32 = vsel %vm385_vm9, %v794_v30, 0  ;;  %1062 = vmatprep.subr.msk.bf16.mxu1 %vm385_vm9, %v795_v31  ;;  %1053 = vmatmul.mubr.msk.bf16.vlgmr.msra.gmra.mrb[4].mxu0 %vm381_vm13, %v336_v28 }
 0x17b   : > { %806 = vmatpush1.bf16.msra.mxu1 %v800_v32  ;;  %v523_v33 = vpop.permute.xlu1 %522  ;;  %570 = vmatprep.mubr.bf16.mxu0 %v1129_v1 }
 0x17c   : > { %v521_v35 = vpop.permute.xlu0 %520 }
 0x17d   : > { %v527_v39 = vsel %vm526_vm15, %v521_v35, %v523_v33 }
 0x17e   : > { %1063 = vmatmul.mubr.msk.bf16.vlgmr.msra.gmra.mrb[0].mxu1 %vm381_vm13, %v342_v34  ;;  %v533_v45 = vsel %vm385_vm9, %v527_v39, 0 }
 0x17f   : > { %v849_v36 = vpop.permute.xlu1 %848  ;;  %898 = vmatprep.mubr.bf16.mxu1 %v1129_v1 }
 0x180   : > { %v851_v37 = vpop.permute.xlu0 %850 }
 0x181   : > { %v855_v38 = vsel %vm854_vm3, %v849_v36, %v851_v37 }
 0x182   : > { %v861_v43 = vsel %vm385_vm9, %v855_v38, 0 }
 0x183   : > { %v853_v40 = vpop.permute.xlu1 %852 }
 0x184   : > { %v856_v41 = vsel %vm854_vm3, %v851_v37, %v853_v40  ;;  %v525_v42 = vpop.permute.xlu0 %524 }
 0x185   : > { %v528_v44 = vsel %vm526_vm15, %v523_v33, %v525_v42  ;;  %1064 = vmatprep.subr.msk.bf16.mxu1 %vm385_vm9, %v856_v41 }
 0x186   : > { %1054 = vmatprep.subr.msk.bf16.mxu0 %vm385_vm9, %v528_v44  ;;  %867 = vmatpush1.bf16.msra.mxu1 %v861_v43 }
 0x187   : > { %539 = vmatpush1.bf16.msra.mxu0 %v533_v45  ;;  %v596_v46 = vpop.permute.xlu1 %595 }
 0x188   : > { %v594_v49 = vpop.permute.xlu0 %593 }
 0x189   : > { %v600_v50 = vsel %vm599_vm8, %v594_v49, %v596_v46 }
 0x18a   : > { %1055 = vmatmul.mubr.msk.bf16.vlgmr.msra.gmra.mrb[4].mxu0 %vm381_vm13, %v338_v47  ;;  %1065 = vmatmul.mubr.msk.bf16.vlgmr.msra.gmra.mrb[0].mxu1 %vm381_vm13, %v343_v48  ;;  %v606_v54 = vsel %vm385_vm9, %v600_v50, 0 }
 0x18b   : > { %v921_v51 = vpop.permute.xlu1 %920  ;;  %643 = vmatprep.mubr.bf16.mxu0 %v1129_v1  ;;  %969 = vmatprep.mubr.bf16.mxu1 %v1129_v1  ;;  %v339_v1 = vld [vmem:[%s1348_s3 + $0xc] sm:$0xf] }
 0x18c   : > { %v598_v52 = vpop.permute.xlu0 %597 }
 0x18d   : > { %v601_v53 = vsel %vm599_vm8, %v596_v46, %v598_v52 }
 0x18e   : > { %1056 = vmatprep.subr.msk.bf16.mxu0 %vm385_vm9, %v601_v53 }
 0x18f   : > { %612 = vmatpush1.bf16.msra.mxu0 %v606_v54  ;;  %v925_v55 = vpop.permute.xlu1 %924 }
 0x190   : > { %v923_v56 = vpop.permute.xlu0 %922 }
 0x191   : > { %v926_v57 = vsel %vm363_vm10, %v921_v51, %v923_v56  ;;  %v927_v58 = vsel %vm363_vm10, %v923_v56, %v925_v55 }
 0x192   : > { %v932_v59 = vsel %vm385_vm9, %v926_v57, 0  ;;  %1066 = vmatprep.subr.msk.bf16.mxu1 %vm385_vm9, %v927_v58 }
 0x193   : > { %938 = vmatpush1.bf16.msra.mxu1 %v932_v59 }
 0x196   : > { %1057 = vmatmul.mubr.msk.bf16.vlgmr.msra.gmra.mrb[4].mxu0 %vm381_vm13, %v339_v1  ;;  %1067 = vmatmul.mubr.msk.bf16.vlgmr.msra.gmra.mrb[0].mxu1 %vm381_vm13, %v344_v60 }
 0x269   : > { %v645_v61 = vpop.f32.mrb[4].mxu0  ;;  %v971_v62 = vpop.f32.mrb[0].mxu1 }
 0x26a   : > { %v1072_v63 = vadd.f32 %v971_v62, %v645_v61  ;;  %v647_v0 = vpop.f32.mrb[5].mxu0  ;;  %v973_v2 = vpop.f32.mrb[1].mxu1 }
 0x26b   : > { %v1073_v3 = vadd.f32 %v973_v2, %v647_v0  ;;  %v649_v4 = vpop.f32.mrb[6].mxu0  ;;  %v975_v5 = vpop.f32.mrb[2].mxu1 }
 0x26c   : > { %v980_v6 = vmax.f32 %v1072_v63, 0.0  ;;  %v650_v7 = vpop.f32.mrb[7].mxu0  ;;  %v976_v8 = vpop.f32.mrb[3].mxu1 }
 0x26d   : > { %v981_v9 = vmax.f32 %v1073_v3, 0.0 }
 0x26e   : > { %982 = vst [vmem:[%s224_s11] sm:$0xff] %v980_v6 }
 0x26f   : > { %983 = vst [vmem:[%s224_s11 + $0x8] sm:$0xff] %v981_v9 }
 0x270 PF: > { %s15_s18 = sadd.s32 1, %s1127_s18  }
 0x271   : > { %p12_p4 = scmp.ge.s32.totalorder %s15_s18, 4  }
 0x273   :  { %14 = sbr.rel (!%p12_p4) target bundleno = 1 (0x1), region = 70 }

</bundles_post_ra>
